<compile_context>
chip_gen: v6e
topology: v6e:2x2x1
jax: 0.10.0
libtpu: 0.0.40
codegen_flags: <defaults>
</compile_context>

<pallas_src>
import functools

import jax
import jax.numpy as jnp
from jax import lax
from jax.experimental import pallas as pl
from jax.experimental.pallas import tpu as pltpu

COMPUTE_DTYPE = jnp.bfloat16   # MXU input dtype; accumulation is always f32.


def _round_up(x, m):
    return ((x + m - 1) // m) * m


def mlp_kernel(x_ref, w1_ref, b1_ref, w2_ref, b2_ref, w3t_ref, b3_ref, ot_ref):
    # fc1 + relu: cast the f32 input tile to bf16 in-kernel (free VPU work),
    # bf16 MXU matmul, f32 accumulate, f32 bias add.
    x = x_ref[...].astype(COMPUTE_DTYPE)
    h1 = jnp.dot(x, w1_ref[...], preferred_element_type=jnp.float32)
    h1 = jnp.maximum(h1 + b1_ref[...], 0.0)

    # fc2 + relu (outputs zero-padded to 128 lanes; pad columns are relu(0)=0).
    h2 = jnp.dot(h1.astype(COMPUTE_DTYPE), w2_ref[...],
                 preferred_element_type=jnp.float32)
    h2 = jnp.maximum(h2 + b2_ref[...], 0.0)

    # fc3, computed transposed: contract the (padded) feature axis of h2 with
    # the feature axis of the pre-transposed w3 -> (out_f, tb).  The store is a
    # dense, full-lane (out_f, tb) f32 block: no padding, no write
    # amplification, no masked vst.
    h3t = lax.dot_general(
        w3t_ref[...], h2.astype(COMPUTE_DTYPE),
        dimension_numbers=(((1,), (1,)), ((), ())),
        preferred_element_type=jnp.float32)
    ot_ref[...] = (h3t + b3_ref[...]).astype(ot_ref.dtype)


def prepare_params(w1, b1, w2, b2, w3, b3):
    """One-time weight packing: bf16 casts, lane padding, w3 transpose.

    Hoisted out of the hot forward so these small XLA ops do not run on every
    call (they are comparable to the kernel itself at small batch sizes).
    """
    h1d = w1.shape[1]                     # 256
    h2d, out_f = w3.shape                 # 64, out_features
    h2p = max(128, _round_up(h2d, 128))   # lane-dense hidden-2 width

    w1c = w1.astype(COMPUTE_DTYPE)                                  # (in_f, 256)
    b1r = b1.astype(jnp.float32).reshape(1, h1d)
    w2c = jnp.zeros((h1d, h2p), COMPUTE_DTYPE).at[:, :h2d].set(
        w2.astype(COMPUTE_DTYPE))                                   # (256, 128)
    b2r = jnp.zeros((1, h2p), jnp.float32).at[:, :h2d].set(
        b2.astype(jnp.float32))
    w3t = jnp.zeros((out_f, h2p), COMPUTE_DTYPE).at[:, :h2d].set(
        w3.T.astype(COMPUTE_DTYPE))                                 # (out_f, 128)
    b3c = b3.astype(jnp.float32).reshape(out_f, 1)
    return (w1c, b1r, w2c, b2r, w3t, b3c)


@functools.partial(jax.jit, static_argnames=("tile_b",))
def mlp_forward_prepared(x, params, *, tile_b=2048):
    w1c, b1r, w2c, b2r, w3t, b3c = params
    B, in_f = x.shape
    h1d = w1c.shape[1]
    h2p = w2c.shape[1]
    out_f = w3t.shape[0]

    # Batch tile: one block for tiny batches (block == full array, so no
    # (8,128) divisibility constraint); otherwise a large multiple-of-128 tile
    # clamped so the "parallel" grid axis keeps >= 2 steps (v7x has 2 TCs).
    if B <= 128:
        tb = B
    else:
        tb = min(tile_b, _round_up(pl.cdiv(B, 2), 128))
    grid = (pl.cdiv(B, tb),)

    out_t = pl.pallas_call(
        mlp_kernel,
        out_shape=jax.ShapeDtypeStruct((out_f, B), x.dtype),
        grid_spec=pltpu.PrefetchScalarGridSpec(
            num_scalar_prefetch=0,
            grid=grid,
            in_specs=[
                pl.BlockSpec((tb, in_f),   lambda i: (i, 0)),  # x tile (f32)
                pl.BlockSpec((in_f, h1d),  lambda i: (0, 0)),  # w1 (resident)
                pl.BlockSpec((1, h1d),     lambda i: (0, 0)),  # b1
                pl.BlockSpec((h1d, h2p),   lambda i: (0, 0)),  # w2 (128-padded)
                pl.BlockSpec((1, h2p),     lambda i: (0, 0)),  # b2 (128-padded)
                pl.BlockSpec((out_f, h2p), lambda i: (0, 0)),  # w3^T (128-padded)
                pl.BlockSpec((out_f, 1),   lambda i: (0, 0)),  # b3 (column)
            ],
            out_specs=pl.BlockSpec((out_f, tb), lambda i: (0, i)),
        ),
        compiler_params=pltpu.CompilerParams(
            dimension_semantics=("parallel",)),
    )(x, w1c, b1r, w2c, b2r, w3t, b3c)

    # (out_f, B) -> (B, out_f): touches 2*out_f*4 bytes per row, far cheaper
    # than the 128-wide f32 padded writeback + slice pass it replaces.
    return out_t.T


def mlp_forward(x, w1, b1, w2, b2, w3, b3, *, tile_b=2048):
    """Convenience wrapper matching the PyTorch MLP.forward semantics."""
    return mlp_forward_prepared(x, prepare_params(w1, b1, w2, b2, w3, b3),
                                tile_b=tile_b)


def init_linear(key, fan_in, fan_out, dtype=jnp.float32):
    # Mimic torch.nn.Linear default init: U(-1/sqrt(fan_in), 1/sqrt(fan_in)).
    kw, kb = jax.random.split(key)
    bound = 1.0 / jnp.sqrt(fan_in)
    w = jax.random.uniform(kw, (fan_in, fan_out), dtype, -bound, bound)
    b = jax.random.uniform(kb, (fan_out,), dtype, -bound, bound)
    return w, b


if __name__ == "__main__":
    key = jax.random.PRNGKey(0)
    k_small, k1, k2, k3, k_mid, k_big = jax.random.split(key, 6)

    in_features = 32
    out_features = 8

    w1, b1 = init_linear(k1, in_features, 256)
    w2, b2 = init_linear(k2, 256, 64)
    w3, b3 = init_linear(k3, 64, out_features)

    # One-time weight prep (hoisted out of the per-call forward).
    params = prepare_params(w1, b1, w2, b2, w3, b3)

    def ref_mlp(x):
        h = jnp.maximum(x @ w1 + b1, 0.0)
        h = jnp.maximum(h @ w2 + b2, 0.0)
        return h @ w3 + b3

    def check(x):
        out = jax.block_until_ready(mlp_forward_prepared(x, params))
        assert out.shape == (x.shape[0], out_features)
        assert jnp.allclose(out, ref_mlp(x), atol=5e-2, rtol=5e-2)

    # Small batch: single grid step (block == full batch).
    check(jax.random.normal(k_small, (8, in_features), jnp.float32))
    # Ragged batch (not a multiple of the tile): exercises the partial last
    # block / OOB write masking path.
    check(jax.random.normal(k_mid, (200, in_features), jnp.float32))
    # Larger batch: tiled path with grid >= 2 ("parallel" axis split).
    check(jax.random.normal(k_big, (512, in_features), jnp.float32))

    print("KERNEL_OK")
</pallas_src>

<mosaic_0001>
module attributes {stable_mosaic.version = 11 : i64} {
  func.func @mlp_kernel(%arg0: i32, %arg1: memref<8x32xf32, #tpu.memory_space<vmem>>, %arg2: memref<32x256xbf16, #tpu.memory_space<vmem>>, %arg3: memref<1x256xf32, #tpu.memory_space<vmem>>, %arg4: memref<256x128xbf16, #tpu.memory_space<vmem>>, %arg5: memref<1x128xf32, #tpu.memory_space<vmem>>, %arg6: memref<8x128xbf16, #tpu.memory_space<vmem>>, %arg7: memref<8x1xf32, #tpu.memory_space<vmem>>, %arg8: memref<8x8xf32, #tpu.memory_space<vmem>>) attributes {dimension_semantics = [#tpu.dimension_semantics<parallel>], iteration_bounds = array<i64: 1>, scalar_prefetch = 0 : i64, scratch_operands = 0 : i64, tpu.core_type = #tpu.core_type<tc>, window_params = [{transform_indices = @transform_0, window_bounds = array<i64: 8, 32>}, {pipeline_mode = #tpu.pipeline_mode<synchronous>, transform_indices = @transform_1, window_bounds = array<i64: 32, 256>}, {pipeline_mode = #tpu.pipeline_mode<synchronous>, transform_indices = @transform_2, window_bounds = array<i64: 1, 256>}, {pipeline_mode = #tpu.pipeline_mode<synchronous>, transform_indices = @transform_3, window_bounds = array<i64: 256, 128>}, {pipeline_mode = #tpu.pipeline_mode<synchronous>, transform_indices = @transform_4, window_bounds = array<i64: 1, 128>}, {pipeline_mode = #tpu.pipeline_mode<synchronous>, transform_indices = @transform_5, window_bounds = array<i64: 8, 128>}, {pipeline_mode = #tpu.pipeline_mode<synchronous>, transform_indices = @transform_6, window_bounds = array<i64: 8, 1>}, {transform_indices = @transform_7, window_bounds = array<i64: 8, 8>}]} {
    %c0 = arith.constant 0 : index
    %c0_0 = arith.constant 0 : index
    %0 = vector.load %arg1[%c0, %c0_0] : memref<8x32xf32, #tpu.memory_space<vmem>>, vector<8x32xf32>
    %1 = arith.truncf %0 : vector<8x32xf32> to vector<8x32xbf16>
    %c0_1 = arith.constant 0 : index
    %c0_2 = arith.constant 0 : index
    %2 = vector.load %arg2[%c0_1, %c0_2] : memref<32x256xbf16, #tpu.memory_space<vmem>>, vector<32x256xbf16>
    %cst = arith.constant dense<0.000000e+00> : vector<8x256xf32>
    %3 = tpu.matmul %1, %2, %cst {dimension_numbers = #tpu.dot_dimension_numbers<[1], [0], [0], [1], [0, 0, 1, 1], [], []>} : vector<8x32xbf16>, vector<32x256xbf16>, vector<8x256xf32> -> vector<8x256xf32>
    %c0_3 = arith.constant 0 : index
    %c0_4 = arith.constant 0 : index
    %4 = vector.load %arg3[%c0_3, %c0_4] : memref<1x256xf32, #tpu.memory_space<vmem>>, vector<1x256xf32>
    %5 = vector.broadcast %4 : vector<1x256xf32> to vector<8x256xf32>
    %6 = arith.addf %3, %5 : vector<8x256xf32>
    %cst_5 = arith.constant 0.000000e+00 : f32
    %7 = vector.broadcast %cst_5 : f32 to vector<8x256xf32>
    %8 = arith.maximumf %6, %7 : vector<8x256xf32>
    %9 = arith.truncf %8 : vector<8x256xf32> to vector<8x256xbf16>
    %c0_6 = arith.constant 0 : index
    %c0_7 = arith.constant 0 : index
    %10 = vector.load %arg4[%c0_6, %c0_7] : memref<256x128xbf16, #tpu.memory_space<vmem>>, vector<256x128xbf16>
    %cst_8 = arith.constant dense<0.000000e+00> : vector<8x128xf32>
    %11 = tpu.matmul %9, %10, %cst_8 {dimension_numbers = #tpu.dot_dimension_numbers<[1], [0], [0], [1], [0, 0, 1, 1], [], []>} : vector<8x256xbf16>, vector<256x128xbf16>, vector<8x128xf32> -> vector<8x128xf32>
    %c0_9 = arith.constant 0 : index
    %c0_10 = arith.constant 0 : index
    %12 = vector.load %arg5[%c0_9, %c0_10] : memref<1x128xf32, #tpu.memory_space<vmem>>, vector<1x128xf32>
    %13 = vector.broadcast %12 : vector<1x128xf32> to vector<8x128xf32>
    %14 = arith.addf %11, %13 : vector<8x128xf32>
    %cst_11 = arith.constant 0.000000e+00 : f32
    %15 = vector.broadcast %cst_11 : f32 to vector<8x128xf32>
    %16 = arith.maximumf %14, %15 : vector<8x128xf32>
    %c0_12 = arith.constant 0 : index
    %c0_13 = arith.constant 0 : index
    %17 = vector.load %arg6[%c0_12, %c0_13] : memref<8x128xbf16, #tpu.memory_space<vmem>>, vector<8x128xbf16>
    %18 = arith.truncf %16 : vector<8x128xf32> to vector<8x128xbf16>
    %cst_14 = arith.constant dense<0.000000e+00> : vector<8x8xf32>
    %19 = tpu.matmul %17, %18, %cst_14 {dimension_numbers = #tpu.dot_dimension_numbers<[1], [1], [0], [0], [0, 0, 1, 0], [], []>} : vector<8x128xbf16>, vector<8x128xbf16>, vector<8x8xf32> -> vector<8x8xf32>
    %c0_15 = arith.constant 0 : index
    %c0_16 = arith.constant 0 : index
    %20 = vector.load %arg7[%c0_15, %c0_16] : memref<8x1xf32, #tpu.memory_space<vmem>>, vector<8x1xf32>
    %21 = vector.broadcast %20 : vector<8x1xf32> to vector<8x8xf32>
    %22 = arith.addf %19, %21 : vector<8x8xf32>
    %c0_17 = arith.constant 0 : index
    %c0_18 = arith.constant 0 : index
    %23 = vector.load %arg8[%c0_17, %c0_18] : memref<8x8xf32, #tpu.memory_space<vmem>>, vector<8x8xf32>
    tpu.vector_store %arg8[%c0_17, %c0_18], %22 {strides = array<i32>} : memref<8x8xf32, #tpu.memory_space<vmem>>, vector<8x8xf32>,
    return
  }
  func.func @transform_0(%arg0: i32) -> (i32, i32) {
    %c0_i32 = arith.constant 0 : i32
    %c0_i32_0 = arith.constant 0 : i32
    return %arg0, %c0_i32 : i32, i32
  }
  func.func @transform_1(%arg0: i32) -> (i32, i32) {
    %c0_i32 = arith.constant 0 : i32
    %c0_i32_0 = arith.constant 0 : i32
    %c0_i32_1 = arith.constant 0 : i32
    return %c0_i32, %c0_i32_0 : i32, i32
  }
  func.func @transform_2(%arg0: i32) -> (i32, i32) {
    %c0_i32 = arith.constant 0 : i32
    %c0_i32_0 = arith.constant 0 : i32
    %c0_i32_1 = arith.constant 0 : i32
    return %c0_i32, %c0_i32_0 : i32, i32
  }
  func.func @transform_3(%arg0: i32) -> (i32, i32) {
    %c0_i32 = arith.constant 0 : i32
    %c0_i32_0 = arith.constant 0 : i32
    %c0_i32_1 = arith.constant 0 : i32
    return %c0_i32, %c0_i32_0 : i32, i32
  }
  func.func @transform_4(%arg0: i32) -> (i32, i32) {
    %c0_i32 = arith.constant 0 : i32
    %c0_i32_0 = arith.constant 0 : i32
    %c0_i32_1 = arith.constant 0 : i32
    return %c0_i32, %c0_i32_0 : i32, i32
  }
  func.func @transform_5(%arg0: i32) -> (i32, i32) {
    %c0_i32 = arith.constant 0 : i32
    %c0_i32_0 = arith.constant 0 : i32
    %c0_i32_1 = arith.constant 0 : i32
    return %c0_i32, %c0_i32_0 : i32, i32
  }
  func.func @transform_6(%arg0: i32) -> (i32, i32) {
    %c0_i32 = arith.constant 0 : i32
    %c0_i32_0 = arith.constant 0 : i32
    %c0_i32_1 = arith.constant 0 : i32
    return %c0_i32, %c0_i32_0 : i32, i32
  }
  func.func @transform_7(%arg0: i32) -> (i32, i32) {
    %c0_i32 = arith.constant 0 : i32
    %c0_i32_0 = arith.constant 0 : i32
    return %c0_i32, %arg0 : i32, i32
  }
}

</mosaic_0001>

<bundles_post_ra>
// kernel: mlp_forward_prepared.1
= control target key start
LH: loop header
LB: loop body
LE: loop exit
PB: predicated region body
PF: predicated region fallthrough
CT: control target
= control target key end

     0   :  { %12 = vsyncpa [#allocation3], 0  ;;  %s608_s0 = inlined_call_operand.vmem [shape: f32[8,32], index: 0, kind: input, shape index: {}]   ;;  %s609_s1 = inlined_call_operand.hbm [shape: bf16[32,256], index: 1, kind: input, shape index: {}]   ;;  %s610_s2 = inlined_call_operand.hbm [shape: f32[1,256], index: 2, kind: input, shape index: {}]   ;;  %s611_s3 = inlined_call_operand.hbm [shape: bf16[256,128], index: 3, kind: input, shape index: {}]   ;;  %s612_s4 = inlined_call_operand.vmem [shape: f32[1,128], index: 4, kind: input, shape index: {}]   ;;  %s613_s5 = inlined_call_operand.vmem [shape: bf16[8,128], index: 5, kind: input, shape index: {}]   ;;  %s614_s6 = inlined_call_operand.vmem [shape: f32[8,1], index: 6, kind: input, shape index: {}]   ;;  %s615_s7 = inlined_call_operand.vmem [shape: f32[8,8], index: 7, kind: output, shape index: {}]  }
   0x1   :  { %13 = vsyncpa [#allocation5], 0  ;;  %s534_s24 = smov [#allocation4]   ;;  %s535_s26 = smov [#allocation2]  }
   0x2   :  { %s34_s25 = sshll.u32 %s534_s24, 4  ;;  %s21_s27 = sshll.u32 %s535_s26, 4  ;;  %s35_s25 = int_to_ptr.vmem [resolvable:$true] %s34_s25  ;;  %s22_s27 = int_to_ptr.vmem [resolvable:$true] %s21_s27 }
   0x3   :  { %s478_s28 = scalar_lea.vmem %s35_s25, 32  ;;  %p483_p1 = scmp.lt.s32.totalorder %s35_s25, %s35_s25 }
   0x4   :  { %p479_p0 = scmp.ne.s32.totalorder %s35_s25, %s478_s28  ;;  %p484_p2 = scmp.lt.s32.totalorder %s478_s28, %s478_s28 }
   0x6   :  { %p485_p3 = por %p484_p2, %p483_p1 }
   0x8   :  { %p486_p4 = pnand %p485_p3, %p479_p0 }
   0xa   :  { %489 = shalt.err (!%p486_p4)
}
   0xb   :  { %37 = dma.hbm_to_vmem [thread:$0]  %s610_s2, 32, %s35_s25, [#allocation5]  }
   0xc   :  { %s498_s8 = scalar_lea.vmem %s22_s27, 512  ;;  %p503_p6 = scmp.lt.s32.totalorder %s22_s27, %s22_s27 }
   0xd   :  { %p499_p5 = scmp.ne.s32.totalorder %s22_s27, %s498_s8  ;;  %p504_p7 = scmp.lt.s32.totalorder %s498_s8, %s498_s8 }
   0xf   :  { %p505_p8 = por %p504_p7, %p503_p6 }
  0x11   :  { %p506_p9 = pnand %p505_p8, %p499_p5 }
  0x13   :  { %509 = shalt.err (!%p506_p9)
}
  0x14   :  { %s536_s9 = smov 128   ;;  %s537_s10 = smov 8  }
  0x15   :  { %27 = dma.hbm_to_vmem [thread:$0]  %s609_s1, 512, %s22_s27, [#allocation3], %s536_s9, %s536_s9, %s537_s10  }
  0x16   :  { %s538_s13 = smov [#allocation6]  }
  0x17   :  { %s43_s14 = sshll.u32 %s538_s13, 4  ;;  %s44_s14 = int_to_ptr.vmem [resolvable:$true] %s43_s14 }
  0x18   :  { %s518_s15 = scalar_lea.vmem %s44_s14, 2048  ;;  %p523_p11 = scmp.lt.s32.totalorder %s44_s14, %s44_s14 }
  0x19   :  { %p519_p10 = scmp.ne.s32.totalorder %s44_s14, %s518_s15  ;;  %p524_p12 = scmp.lt.s32.totalorder %s518_s15, %s518_s15 }
  0x1b   :  { %p525_p13 = por %p524_p12, %p523_p11 }
  0x1d   :  { %p526_p0 = pnand %p525_p13, %p519_p10 }
  0x1f   :  { %529 = shalt.err (!%p526_p0)
}
  0x20   :  { %s539_s2 = smov 64   ;;  %s540_s16 = smov 4  }
  0x21   :  { %49 = dma.hbm_to_vmem [thread:$0]  %s611_s3, 2048, %s44_s14, [#allocation5], %s539_s2, %s539_s2, %s540_s16  }
  0x22   :  { %530 = dma.done.wait [#allocation3], 512  }
  0x23   :  { %531 = vsyncadd [#allocation3], 4294966784 }
  0x24   :  { %532 = dma.done.wait [#allocation5], 2080  }
  0x25   :  { %533 = vsyncadd [#allocation5], 4294965216  ;;  %v541_v0 = vmov 0   ;;  %v448_v1 = vld [vmem:[#allocation2 + $0x14] ss:$8 sps:$4 sm:$0xff]   ;;  %v66_v5 = vld [vmem:[%s608_s0] sm:$0xff]  ;;  %v74_v23 = vlaneseq }
  0x26   :  { %140 = vmatprep.mubr.bf16.mxu0 %v541_v0  ;;  %447 = vset.pattern.permute.xlu0 %v541_v0  ;;  %v450_v2 = vld [vmem:[#allocation2 + $0x10] ss:$8 sps:$4 sm:$0xff]   ;;  %v451_v3 = vld [vmem:[#allocation2 + $0x4] ss:$8 sps:$4 sm:$0xff]   ;;  %v453_v4 = vld [vmem:[#allocation2] ss:$8 sps:$4 sm:$0xff]   ;;  %v67_v9 = vpack.c.bf16 %v66_v5, %v66_v5 }
  0x27   :  { %120 = vmatprep.subr.bf16.mxu0 %v448_v1  ;;  %v454_v6 = vld [vmem:[#allocation6 + $0x78] sm:$0xff]   ;;  %v456_v8 = vld [vmem:[#allocation6 + $0x70] sm:$0xff]   ;;  %vm104_vm0 = vcmask 261120   ;;  %v458_v11 = vld [vmem:[#allocation6 + $0x68] sm:$0xff]   ;;  %v75_v24 = vshrl.u32 %v74_v23, 7  ;;  %v542_v40 = vmov 0.0  }
  0x28   :  { %121 = vmatpush1.bf16.msra.mxu0 %v450_v2  ;;  %v455_v7 = vld [vmem:[#allocation6 + $0x38] sm:$0xff]   ;;  %407 = vmatprep.subr.bf16.mxu1 %v454_v6  ;;  %v457_v10 = vld [vmem:[#allocation6 + $0x30] sm:$0xff]   ;;  %v459_v12 = vld [vmem:[#allocation6 + $0x28] sm:$0xff]   ;;  %vm543_vm1 = vmmov 0   ;;  %vm377_vm2 = vcmask 64512  }
  0x29   :  { %122 = vmatprep.subr.bf16.mxu0 %v451_v3  ;;  %408 = vmatpush3.bf16.msra.mxu1 %v455_v7  ;;  %v460_v13 = vld [vmem:[#allocation6 + $0x60] sm:$0xff]   ;;  %v462_v15 = vld [vmem:[#allocation6 + $0x58] sm:$0xff]   ;;  %v464_v17 = vld [vmem:[#allocation6 + $0x50] sm:$0xff]   ;;  %v76_v25 = vsub.s32 0, %v75_v24  ;;  %v80_v27 = vsub.s32 1, %v75_v24 }
  0x2a   :  { %409 = vmatprep.subr.bf16.mxu1 %v456_v8  ;;  %v461_v14 = vld [vmem:[#allocation6 + $0x20] sm:$0xff]   ;;  %v463_v16 = vld [vmem:[#allocation6 + $0x18] sm:$0xff]   ;;  %v465_v18 = vld [vmem:[#allocation6 + $0x10] sm:$0xff]  }
  0x2b   :  { %v466_v19 = vld [vmem:[#allocation6 + $0x48] sm:$0xff]   ;;  %v468_v21 = vld [vmem:[#allocation6 + $0x40] sm:$0xff]   ;;  %v72_v26 = vld [vmem:[#allocation4] sm:$0x3] }
  0x2c   :  { %123 = vmatpush1.bf16.msra.mxu0 %v453_v4  ;;  %v467_v20 = vld [vmem:[#allocation6 + $0x8] sm:$0xff]   ;;  %v469_v22 = vld [vmem:[#allocation6] sm:$0xff]   ;;  %v77_v28 = vrot.slane %v72_v26, %v76_v25  ;;  %v81_v29 = vrot.slane %v72_v26, %v80_v27  ;;  %v390_v43 = vld [vmem:[%s612_s4] ss:$0 sm:$0xff] }
  0x2d   :  { %410 = vmatpush3.bf16.msra.mxu1 %v457_v10  ;;  %431 = vmatprep.subr.bf16.mxu0 %v542_v40  ;;  %v331_v41 = vld [vmem:[%s614_s6] sm:$0xff] }
  0x2e   :  { %411 = vmatprep.subr.bf16.mxu1 %v458_v11  ;;  %334 = vperm.xlu0 %447, %v331_v41   ;;  %v329_v51 = vld [vmem:[%s613_s5] sm:$0xf] }
  0x2f   :  { %389 = vmatmul.mubr.msk.bf16.vlgmr.msra.gmra.mxu0 %vm104_vm0, %v67_v9 }
  0x30   :  { %433 = vmatprep.mubr.msk.bf16.mxu0 %vm543_vm1, %v542_v40 }
  0x31   :  { %412 = vmatpush3.bf16.msra.mxu1 %v459_v12 }
  0x32   :  { %413 = vmatprep.subr.bf16.mxu1 %v460_v13 }
  0x35   :  { %414 = vmatpush3.bf16.msra.mxu1 %v461_v14 }
  0x36   :  { %415 = vmatprep.subr.bf16.mxu1 %v462_v15 }
  0x39   :  { %416 = vmatpush3.bf16.msra.mxu1 %v463_v16 }
  0x3a   :  { %417 = vmatprep.subr.bf16.mxu1 %v464_v17 }
  0x3d   :  { %418 = vmatpush3.bf16.msra.mxu1 %v465_v18 }
  0x3e   :  { %419 = vmatprep.subr.bf16.mxu1 %v466_v19 }
  0x41   :  { %420 = vmatpush3.bf16.msra.mxu1 %v467_v20 }
  0x42   :  { %421 = vmatprep.subr.bf16.mxu1 %v468_v21 }
  0x45   :  { %422 = vmatpush3.bf16.msra.mxu1 %v469_v22 }
  0xa9   :  { %v335_v52 = vpop.permute.xlu0 %334 }
  0xef   :  { %v142_v30 = vpop.f32.mrf.mxu0 }
  0xf0   :  { %v143_v31 = vadd.f32 %v142_v30, %v77_v28 }
  0xf1   :  { %v144_v32 = vpop.f32.mrf.mxu0 }
  0xf2   :  { %v145_v33 = vadd.f32 %v144_v32, %v81_v29  ;;  %v149_v34 = vmax.f32 %v143_v31, 0.0 }
  0xf3   :  { %v146_v35 = vpop.f32.mrf.mxu0 }
  0xf4   :  { %v150_v36 = vmax.f32 %v145_v33, 0.0  ;;  %v151_v39 = vpack.c.bf16 %v149_v34, %v149_v34 }
  0xf5   :  { %v147_v37 = vpop.f32.mrf.mxu0 }
  0xf6   :  { %v152_v38 = vpack.c.bf16 %v150_v36, %v150_v36 }
  0xf8   :  { %320 = vmatprep.mubr.bf16.mxu1 %v152_v38 }
  0xf9   :  { %321 = vmatmul.mubr.bf16.vlgmr.msra.gmra.mxu1 %v151_v39 }
 0x1b9   :  { %v423_v42 = vpop.f32.mrf.mxu1 }
 0x1bb   :  { %v424_v44 = vpop.f32.mrf.mxu1 }
 0x1bc   :  { %v425_v45 = vadd.f32 %v424_v44, %v423_v42 }
 0x1bd   :  { %v426_v46 = vpop.f32.mrf.mxu1 }
 0x1be   :  { %v323_v47 = vadd.f32 %v425_v45, %v390_v43 }
 0x1bf   :  { %v427_v48 = vpop.f32.mrf.mxu1 }
 0x1c0   :  { %v328_v49 = vmax.f32 %v323_v47, 0.0 }
 0x1c2   :  { %v330_v50 = vpack.c.bf16 %v328_v49, %v328_v49 }
 0x1c4   :  { %432 = vmatpush3.bf16.xpose.msra.mxu0 %v330_v50 }
 0x1cb   :  { %434 = vmatmul.mubr.bf16.vlgmr.msra.gmra.mxu0 %v329_v51 }
 0x28b   :  { %v371_v53 = vpop.f32.mrf.mxu0 }
 0x28c   :  { %v372_v54 = vadd.f32 %v371_v53, %v335_v52 }
 0x28d   :  { %v435_v55 = vpop.f32.mrf.mxu0 }
 0x28e   :  { %378 = vst.msk [vmem:[%s615_s7] sm:$0xff] %vm377_vm2, %v372_v54 }
 0x28f   :  { %v374_v56 = vpop.f32.mrf.mxu0 }
 0x291   :  { %v436_v57 = vpop.f32.mrf.mxu0 }
 0x292   :  { %383 = vsyncpa [#allocation3], 1 }
 0x293   :  { %384 = vsyncpa [#allocation5], 1 }

</bundles_post_ra>
